<compile_context>
chip_gen: v7x
topology: tpu7x:2x2x1
jax: 0.10.0
libtpu: 0.0.40
codegen_flags: <defaults>
</compile_context>

<pallas_src>
import functools

import jax
import jax.numpy as jnp
from jax.experimental import pallas as pl
from jax.experimental.pallas import tpu as pltpu


def _round_up(x, m):
    return (x + m - 1) // m * m


def cbow_logsoftmax_kernel(s_ref, wT_ref, b_ref, out_ref,
                           logits_ref, m_ref, l_ref, lse_ref, *, resident):
    """Linear (summed @ W.T + b) + streaming log_softmax over vocab tiles.

    Grid = (batch_tiles, 2 passes, vocab_tiles).
      pass 0: logits tile -> VMEM scratch, online max / sum-exp.
      pass 1: lse computed once (j == 0), normalized log-probs written out.
    """
    p = pl.program_id(1)        # pass: 0 = logits + stats, 1 = normalize + write
    j = pl.program_id(2)        # vocab tile index

    # ---------------- pass 0: logits tile + streaming softmax stats ----------------
    @pl.when((p == 0) & (j == 0))
    def _():
        m_ref[...] = jnp.full_like(m_ref, -1e30)
        l_ref[...] = jnp.zeros_like(l_ref)

    @pl.when(p == 0)
    def _():
        # resident: wT_ref holds all vocab tiles (nv, E_pad, tn) -> pick tile j.
        # streaming: wT_ref holds the current tile only (1, E_pad, tn).
        w = wT_ref[j] if resident else wT_ref[0]
        b = b_ref[j] if resident else b_ref[0]
        logits = jnp.dot(s_ref[...], w,
                         preferred_element_type=jnp.float32) + b       # (tb, tn) f32
        logits_ref[j] = logits                                          # cache for pass 1
        m_prev = m_ref[...]
        m_new = jnp.maximum(m_prev, jnp.max(logits, axis=1, keepdims=True))
        l_ref[...] = (l_ref[...] * jnp.exp(m_prev - m_new)
                      + jnp.sum(jnp.exp(logits - m_new), axis=1, keepdims=True))
        m_ref[...] = m_new

    # ---------------- pass 1: normalize cached logits, write output ----------------
    @pl.when((p == 1) & (j == 0))
    def _():
        lse_ref[...] = m_ref[...] + jnp.log(l_ref[...])   # hoisted: once per batch tile

    @pl.when(p == 1)
    def _():
        out_ref[...] = logits_ref[j] - lse_ref[...]


def prepare_params(lin_weight, lin_bias, *, vocab_tile=512,
                   param_dtype=jnp.bfloat16):
    """One-time prep (outside jit): pad V to a multiple of vocab_tile and E to 128,
    pre-transpose W into per-vocab-tile slabs (nv, E_pad, tn) in bf16, and lay the
    bias out as (nv, 1, tn) f32 with padded lanes set to -1e30."""
    V, E = lin_weight.shape
    V_pad = _round_up(V, vocab_tile)
    E_pad = _round_up(E, 128)
    nv = V_pad // vocab_tile

    wT = jnp.zeros((E_pad, V_pad), param_dtype).at[:E, :V].set(
        lin_weight.T.astype(param_dtype))
    wT_tiles = wT.reshape(E_pad, nv, vocab_tile).transpose(1, 0, 2)     # (nv, E_pad, tn)

    bias = jnp.full((V_pad,), -1e30, jnp.float32).at[:V].set(
        lin_bias.astype(jnp.float32))
    bias_tiles = bias.reshape(nv, 1, vocab_tile)                        # (nv, 1, tn)
    return wT_tiles, bias_tiles


def cbow_forward(idx, emb_table, wT_tiles, bias_tiles, *, vocab_size,
                 batch_tile=None, resident_weight_bytes=12 * 1024 * 1024):
    """idx: (B, C) int32; emb_table: (V, E) f32;
    wT_tiles: (nv, E_pad, tn) bf16; bias_tiles: (nv, 1, tn) f32."""
    B, C = idx.shape
    nv, E_pad, tn = wT_tiles.shape
    V_pad = nv * tn
    E = emb_table.shape[1]

    # Embedding gather + context sum in XLA (B*C*E work; the vocab-wide matmul
    # below dominates).  Cast once to bf16 for the MXU -- no per-tile casts.
    summed = jnp.take(emb_table, idx, axis=0).sum(axis=1)               # (B, E) f32

    if batch_tile is None:
        B8 = _round_up(B, 8)
        if B8 <= 16:
            batch_tile = B8
        else:
            # >= 2 batch tiles so the 'parallel' axis can split across the two
            # TensorCores on v7x; cap at 256 rows (keeps scratch small on 64 MiB parts).
            batch_tile = min(256, _round_up((B8 + 1) // 2, 8))
    tb = batch_tile
    B_pad = _round_up(B, tb)
    nb = B_pad // tb

    summed_p = jnp.zeros((B_pad, E_pad), jnp.bfloat16).at[:B, :E].set(
        summed.astype(jnp.bfloat16))

    w_bytes = int(wT_tiles.size) * wT_tiles.dtype.itemsize
    resident = w_bytes <= resident_weight_bytes
    if resident:
        # Whole bf16 W.T resident in VMEM: constant index_map -> fetched once
        # for the entire grid (biggest HBM saving when nb > 1).
        wT_spec = pl.BlockSpec((nv, E_pad, tn), lambda i, p, j: (0, 0, 0))
        b_spec = pl.BlockSpec((nv, 1, tn), lambda i, p, j: (0, 0, 0))
    else:
        # Stream one (E_pad, tn) slab per vocab tile in pass 0; pin to the last
        # fetched slab during pass 1 so nothing is re-fetched.
        wT_spec = pl.BlockSpec(
            (1, E_pad, tn), lambda i, p, j: (jnp.where(p == 0, j, nv - 1), 0, 0))
        b_spec = pl.BlockSpec(
            (1, 1, tn), lambda i, p, j: (jnp.where(p == 0, j, nv - 1), 0, 0))

    # Output tile is written only in pass 1; during pass 0 it stays pinned on
    # block (i, 0) so it is never flushed before being written.
    out_spec = pl.BlockSpec((tb, tn), lambda i, p, j: (i, jnp.where(p == 1, j, 0)))
    summed_spec = pl.BlockSpec((tb, E_pad), lambda i, p, j: (i, 0))

    # Explicit, v7x-safe VMEM budget (64 MiB physical there).
    vmem_need = (nv * tb * tn * 4                 # logits scratch
                 + 2 * tb * E_pad * 2             # summed blocks (double-buffered)
                 + 2 * tb * tn * 4                # output blocks
                 + (2 * nv if resident else 2) * E_pad * tn * 2   # W.T buffers
                 + (2 * nv if resident else 2) * tn * 4           # bias buffers
                 + 4 * tb * 4 * 128)              # stats scratch (padded)
    vmem_limit = int(min(max(vmem_need + vmem_need // 2 + (1 << 20), 32 << 20),
                         56 << 20))

    flops = 2 * B_pad * E_pad * V_pad
    transcendentals = B_pad * V_pad
    bytes_accessed = int(summed_p.size * 2
                         + (1 if resident else nb) * w_bytes
                         + nb * bias_tiles.size * 4
                         + B_pad * V_pad * 4)

    out = pl.pallas_call(
        functools.partial(cbow_logsoftmax_kernel, resident=resident),
        out_shape=jax.ShapeDtypeStruct((B_pad, V_pad), jnp.float32),
        grid=(nb, 2, nv),
        in_specs=[summed_spec, wT_spec, b_spec],
        out_specs=out_spec,
        scratch_shapes=[
            pltpu.VMEM((nv, tb, tn), jnp.float32),   # cached logits (kills recompute)
            pltpu.VMEM((tb, 1), jnp.float32),        # running max
            pltpu.VMEM((tb, 1), jnp.float32),        # running sum-exp
            pltpu.VMEM((tb, 1), jnp.float32),        # lse (computed once per batch tile)
        ],
        compiler_params=pltpu.CompilerParams(
            dimension_semantics=("parallel", "arbitrary", "arbitrary"),
            vmem_limit_bytes=vmem_limit,
        ),
        cost_estimate=pl.CostEstimate(flops=flops,
                                      transcendentals=transcendentals,
                                      bytes_accessed=bytes_accessed),
    )(summed_p, wT_tiles, bias_tiles)

    return out[:B, :vocab_size]


def cbow_reference(idx, emb_table, lin_weight, lin_bias):
    """Pure-JAX (f32) reference matching the PyTorch forward."""
    e = jnp.take(emb_table, idx, axis=0)          # (B, C, E)
    s = jnp.sum(e, axis=1)                        # (B, E)
    logits = s @ lin_weight.T + lin_bias          # (B, V)
    return jax.nn.log_softmax(logits, axis=1)


if __name__ == "__main__":
    # Exercises padding (V=500 -> 512, E=96 -> 128) and both W.T paths.
    vocab_size = 500
    embedding_dim = 96
    window_size = 2
    batch = 16
    context_len = 2 * window_size                 # CBOW context on both sides

    key = jax.random.PRNGKey(0)
    k_idx, k_emb, k_w, k_b = jax.random.split(key, 4)

    x = jax.random.randint(k_idx, (batch, context_len), 0, vocab_size,
                           dtype=jnp.int32)
    emb_table = jax.random.normal(k_emb, (vocab_size, embedding_dim),
                                  dtype=jnp.float32) * 0.1
    lin_weight = jax.random.normal(k_w, (vocab_size, embedding_dim),
                                   dtype=jnp.float32) * 0.1
    lin_bias = jax.random.normal(k_b, (vocab_size,), dtype=jnp.float32) * 0.1

    ref = cbow_reference(x, emb_table, lin_weight, lin_bias)

    # --- config 1: default (vocab_tile=512, bf16 W.T fully VMEM-resident) ---
    wT_t, b_t = prepare_params(lin_weight, lin_bias, vocab_tile=512)
    fwd = jax.jit(functools.partial(cbow_forward, vocab_size=vocab_size))
    out = jax.block_until_ready(fwd(x, emb_table, wT_t, b_t))
    assert out.shape == (batch, vocab_size)
    err = float(jnp.max(jnp.abs(out - ref)))
    # bf16 MXU weights vs f32 reference -> a few 1e-3 of slack on log-probs.
    assert err < 3e-2, f"resident path mismatch vs reference, max abs err {err}"

    # --- config 2: streaming W.T path, multiple vocab / batch tiles ---
    x2 = jax.random.randint(jax.random.PRNGKey(1), (40, context_len), 0,
                            vocab_size, dtype=jnp.int32)
    ref2 = cbow_reference(x2, emb_table, lin_weight, lin_bias)
    wT_t2, b_t2 = prepare_params(lin_weight, lin_bias, vocab_tile=128)
    fwd2 = jax.jit(functools.partial(cbow_forward, vocab_size=vocab_size,
                                     resident_weight_bytes=0))
    out2 = jax.block_until_ready(fwd2(x2, emb_table, wT_t2, b_t2))
    err2 = float(jnp.max(jnp.abs(out2 - ref2)))
    assert err2 < 3e-2, f"streaming path mismatch vs reference, max abs err {err2}"

    print("KERNEL_OK")
</pallas_src>

<mosaic_0001>
module attributes {stable_mosaic.version = 11 : i64} {
  func.func @cbow_logsoftmax_kernel(%arg0: i32, %arg1: i32, %arg2: i32, %arg3: memref<16x128xbf16, #tpu.memory_space<vmem>>, %arg4: memref<1x128x512xbf16, #tpu.memory_space<vmem>>, %arg5: memref<1x1x512xf32, #tpu.memory_space<vmem>>, %arg6: memref<16x512xf32, #tpu.memory_space<vmem>>, %arg7: memref<1x16x512xf32, #tpu.memory_space<vmem>>, %arg8: memref<16x1xf32, #tpu.memory_space<vmem>>, %arg9: memref<16x1xf32, #tpu.memory_space<vmem>>, %arg10: memref<16x1xf32, #tpu.memory_space<vmem>>) attributes {dimension_semantics = [#tpu.dimension_semantics<parallel>, #tpu.dimension_semantics<arbitrary>, #tpu.dimension_semantics<arbitrary>], iteration_bounds = array<i64: 1, 2, 1>, scalar_prefetch = 0 : i64, scratch_operands = 4 : i64, tpu.core_type = #tpu.core_type<tc>, window_params = [{transform_indices = @transform_0, window_bounds = array<i64: 16, 128>}, {pipeline_mode = #tpu.pipeline_mode<synchronous>, transform_indices = @transform_1, window_bounds = array<i64: 1, 128, 512>}, {pipeline_mode = #tpu.pipeline_mode<synchronous>, transform_indices = @transform_2, window_bounds = array<i64: 1, 1, 512>}, {transform_indices = @transform_3, window_bounds = array<i64: 16, 512>}]} {
    %c0_i32 = arith.constant 0 : i32
    %0 = arith.cmpi eq, %arg1, %c0_i32 : i32
    %c0_i32_0 = arith.constant 0 : i32
    %1 = arith.cmpi eq, %arg2, %c0_i32_0 : i32
    %2 = arith.andi %0, %1 : i1
    %3 = arith.extui %2 : i1 to i32
    %c0_i32_1 = arith.constant 0 : i32
    %4 = arith.cmpi ne, %3, %c0_i32_1 : i32
    scf.if %4 {
      %cst = arith.constant -1.000000e+30 : f32
      %16 = vector.broadcast %cst : f32 to vector<16x1xf32>
      %c0 = arith.constant 0 : index
      %c0_8 = arith.constant 0 : index
      %17 = vector.load %arg8[%c0, %c0_8] : memref<16x1xf32, #tpu.memory_space<vmem>>, vector<16x1xf32>
      tpu.vector_store %arg8[%c0, %c0_8], %16 {strides = array<i32>} : memref<16x1xf32, #tpu.memory_space<vmem>>, vector<16x1xf32>,
      %cst_9 = arith.constant 0.000000e+00 : f32
      %18 = vector.broadcast %cst_9 : f32 to vector<16x1xf32>
      %c0_10 = arith.constant 0 : index
      %c0_11 = arith.constant 0 : index
      %19 = vector.load %arg9[%c0_10, %c0_11] : memref<16x1xf32, #tpu.memory_space<vmem>>, vector<16x1xf32>
      tpu.vector_store %arg9[%c0_10, %c0_11], %18 {strides = array<i32>} : memref<16x1xf32, #tpu.memory_space<vmem>>, vector<16x1xf32>,
    } else {
    }
    %c0_i32_2 = arith.constant 0 : i32
    %5 = arith.cmpi eq, %arg1, %c0_i32_2 : i32
    %6 = arith.extui %5 : i1 to i32
    %c0_i32_3 = arith.constant 0 : i32
    %7 = arith.cmpi ne, %6, %c0_i32_3 : i32
    scf.if %7 {
      %16 = arith.index_cast %arg2 : i32 to index
      %c0 = arith.constant 0 : index
      %c0_8 = arith.constant 0 : index
      %17 = vector.load %arg4[%16, %c0, %c0_8] : memref<1x128x512xbf16, #tpu.memory_space<vmem>>, vector<1x128x512xbf16>
      %18 = vector.shape_cast %17 : vector<1x128x512xbf16> to vector<128x512xbf16>
      %19 = arith.index_cast %arg2 : i32 to index
      %c0_9 = arith.constant 0 : index
      %c0_10 = arith.constant 0 : index
      %20 = vector.load %arg5[%19, %c0_9, %c0_10] : memref<1x1x512xf32, #tpu.memory_space<vmem>>, vector<1x1x512xf32>
      %21 = vector.shape_cast %20 : vector<1x1x512xf32> to vector<1x512xf32>
      %c0_11 = arith.constant 0 : index
      %c0_12 = arith.constant 0 : index
      %22 = vector.load %arg3[%c0_11, %c0_12] : memref<16x128xbf16, #tpu.memory_space<vmem>>, vector<16x128xbf16>
      %cst = arith.constant dense<0.000000e+00> : vector<16x512xf32>
      %23 = tpu.matmul %22, %18, %cst {dimension_numbers = #tpu.dot_dimension_numbers<[1], [0], [0], [1], [0, 0, 1, 1], [], []>} : vector<16x128xbf16>, vector<128x512xbf16>, vector<16x512xf32> -> vector<16x512xf32>
      %24 = vector.broadcast %21 : vector<1x512xf32> to vector<16x512xf32>
      %25 = arith.addf %23, %24 : vector<16x512xf32>
      %26 = arith.index_cast %arg2 : i32 to index
      %c0_13 = arith.constant 0 : index
      %c0_14 = arith.constant 0 : index
      %27 = vector.load %arg7[%26, %c0_13, %c0_14] : memref<1x16x512xf32, #tpu.memory_space<vmem>>, vector<1x16x512xf32>
      %28 = vector.shape_cast %27 : vector<1x16x512xf32> to vector<16x512xf32>
      %29 = vector.shape_cast %25 : vector<16x512xf32> to vector<1x16x512xf32>
      tpu.vector_store %arg7[%26, %c0_13, %c0_14], %29 {strides = array<i32>} : memref<1x16x512xf32, #tpu.memory_space<vmem>>, vector<1x16x512xf32>,
      %c0_15 = arith.constant 0 : index
      %c0_16 = arith.constant 0 : index
      %30 = vector.load %arg8[%c0_15, %c0_16] : memref<16x1xf32, #tpu.memory_space<vmem>>, vector<16x1xf32>
      %cst_17 = arith.constant dense<0xFF800000> : vector<16xf32>
      %31 = vector.multi_reduction <maximumf>, %25, %cst_17 [1] : vector<16x512xf32> to vector<16xf32>
      %32 = vector.shape_cast %31 : vector<16xf32> to vector<16x1xf32>
      %33 = arith.maximumf %30, %32 : vector<16x1xf32>
      %c0_18 = arith.constant 0 : index
      %c0_19 = arith.constant 0 : index
      %34 = vector.load %arg9[%c0_18, %c0_19] : memref<16x1xf32, #tpu.memory_space<vmem>>, vector<16x1xf32>
      %35 = arith.subf %30, %33 : vector<16x1xf32>
      %36 = math.exp %35 : vector<16x1xf32>
      %37 = arith.mulf %34, %36 : vector<16x1xf32>
      %38 = vector.broadcast %33 : vector<16x1xf32> to vector<16x512xf32>
      %39 = arith.subf %25, %38 : vector<16x512xf32>
      %40 = math.exp %39 : vector<16x512xf32>
      %cst_20 = arith.constant dense<0.000000e+00> : vector<16xf32>
      %41 = vector.multi_reduction <add>, %40, %cst_20 [1] : vector<16x512xf32> to vector<16xf32>
      %42 = vector.shape_cast %41 : vector<16xf32> to vector<16x1xf32>
      %43 = arith.addf %37, %42 : vector<16x1xf32>
      %c0_21 = arith.constant 0 : index
      %c0_22 = arith.constant 0 : index
      %44 = vector.load %arg9[%c0_21, %c0_22] : memref<16x1xf32, #tpu.memory_space<vmem>>, vector<16x1xf32>
      tpu.vector_store %arg9[%c0_21, %c0_22], %43 {strides = array<i32>} : memref<16x1xf32, #tpu.memory_space<vmem>>, vector<16x1xf32>,
      %c0_23 = arith.constant 0 : index
      %c0_24 = arith.constant 0 : index
      %45 = vector.load %arg8[%c0_23, %c0_24] : memref<16x1xf32, #tpu.memory_space<vmem>>, vector<16x1xf32>
      tpu.vector_store %arg8[%c0_23, %c0_24], %33 {strides = array<i32>} : memref<16x1xf32, #tpu.memory_space<vmem>>, vector<16x1xf32>,
    } else {
    }
    %c1_i32 = arith.constant 1 : i32
    %8 = arith.cmpi eq, %arg1, %c1_i32 : i32
    %c0_i32_4 = arith.constant 0 : i32
    %9 = arith.cmpi eq, %arg2, %c0_i32_4 : i32
    %10 = arith.andi %8, %9 : i1
    %11 = arith.extui %10 : i1 to i32
    %c0_i32_5 = arith.constant 0 : i32
    %12 = arith.cmpi ne, %11, %c0_i32_5 : i32
    scf.if %12 {
      %c0 = arith.constant 0 : index
      %c0_8 = arith.constant 0 : index
      %16 = vector.load %arg8[%c0, %c0_8] : memref<16x1xf32, #tpu.memory_space<vmem>>, vector<16x1xf32>
      %c0_9 = arith.constant 0 : index
      %c0_10 = arith.constant 0 : index
      %17 = vector.load %arg9[%c0_9, %c0_10] : memref<16x1xf32, #tpu.memory_space<vmem>>, vector<16x1xf32>
      %18 = math.log %17 : vector<16x1xf32>
      %19 = arith.addf %16, %18 : vector<16x1xf32>
      %c0_11 = arith.constant 0 : index
      %c0_12 = arith.constant 0 : index
      %20 = vector.load %arg10[%c0_11, %c0_12] : memref<16x1xf32, #tpu.memory_space<vmem>>, vector<16x1xf32>
      tpu.vector_store %arg10[%c0_11, %c0_12], %19 {strides = array<i32>} : memref<16x1xf32, #tpu.memory_space<vmem>>, vector<16x1xf32>,
    } else {
    }
    %c1_i32_6 = arith.constant 1 : i32
    %13 = arith.cmpi eq, %arg1, %c1_i32_6 : i32
    %14 = arith.extui %13 : i1 to i32
    %c0_i32_7 = arith.constant 0 : i32
    %15 = arith.cmpi ne, %14, %c0_i32_7 : i32
    scf.if %15 {
      %16 = arith.index_cast %arg2 : i32 to index
      %c0 = arith.constant 0 : index
      %c0_8 = arith.constant 0 : index
      %17 = vector.load %arg7[%16, %c0, %c0_8] : memref<1x16x512xf32, #tpu.memory_space<vmem>>, vector<1x16x512xf32>
      %18 = vector.shape_cast %17 : vector<1x16x512xf32> to vector<16x512xf32>
      %c0_9 = arith.constant 0 : index
      %c0_10 = arith.constant 0 : index
      %19 = vector.load %arg10[%c0_9, %c0_10] : memref<16x1xf32, #tpu.memory_space<vmem>>, vector<16x1xf32>
      %20 = vector.broadcast %19 : vector<16x1xf32> to vector<16x512xf32>
      %21 = arith.subf %18, %20 : vector<16x512xf32>
      %c0_11 = arith.constant 0 : index
      %c0_12 = arith.constant 0 : index
      %22 = vector.load %arg6[%c0_11, %c0_12] : memref<16x512xf32, #tpu.memory_space<vmem>>, vector<16x512xf32>
      tpu.vector_store %arg6[%c0_11, %c0_12], %21 {strides = array<i32>} : memref<16x512xf32, #tpu.memory_space<vmem>>, vector<16x512xf32>,
    } else {
    }
    return
  }
  func.func @transform_0(%arg0: i32, %arg1: i32, %arg2: i32) -> (i32, i32) {
    %c0_i32 = arith.constant 0 : i32
    %c0_i32_0 = arith.constant 0 : i32
    return %arg0, %c0_i32 : i32, i32
  }
  func.func @transform_1(%arg0: i32, %arg1: i32, %arg2: i32) -> (i32, i32, i32) {
    %c0_i32 = arith.constant 0 : i32
    %c0_i32_0 = arith.constant 0 : i32
    %c0_i32_1 = arith.constant 0 : i32
    %c0_i32_2 = arith.constant 0 : i32
    return %c0_i32, %c0_i32_0, %c0_i32_1 : i32, i32, i32
  }
  func.func @transform_2(%arg0: i32, %arg1: i32, %arg2: i32) -> (i32, i32, i32) {
    %c0_i32 = arith.constant 0 : i32
    %c0_i32_0 = arith.constant 0 : i32
    %c0_i32_1 = arith.constant 0 : i32
    %c0_i32_2 = arith.constant 0 : i32
    return %c0_i32, %c0_i32_0, %c0_i32_1 : i32, i32, i32
  }
  func.func @transform_3(%arg0: i32, %arg1: i32, %arg2: i32) -> (i32, i32) {
    %c1_i32 = arith.constant 1 : i32
    %0 = arith.cmpi eq, %arg1, %c1_i32 : i32
    %c0_i32 = arith.constant 0 : i32
    %1 = arith.select %0, %arg2, %c0_i32 : i32
    %c0_i32_0 = arith.constant 0 : i32
    return %arg0, %1 : i32, i32
  }
}

</mosaic_0001>

<bundles_post_ra>
// kernel: cbow_forward.1
= control target key start
LH: loop header
LB: loop body
LE: loop exit
PB: predicated region body
PF: predicated region fallthrough
CT: control target
= control target key end

     0   :  { %8 = vsyncpa [#allocation7], 0  ;;  %s1195_s0 = inlined_call_operand.vmem [shape: bf16[16,128], index: 0, kind: input, shape index: {}]   ;;  %s1196_s1 = inlined_call_operand.vmem [shape: bf16[1,128,512], index: 1, kind: input, shape index: {}]   ;;  %s1197_s2 = inlined_call_operand.vmem [shape: f32[1,1,512], index: 2, kind: input, shape index: {}]   ;;  %s1198_s3 = inlined_call_operand.hbm [shape: f32[16,512], index: 3, kind: output, shape index: {}]  }
   0x1   :  { %10 = vsyncpa [#allocation7 + $0x1], 0  ;;  %s1027_s12 = smov 0   ;;  %s1029_s13 = smov 0  }
   0x2   :  { %s1031_s14 = smov 0  }
   0x3 LB: > { %s780_s15 = sadd.s32 4294967295, %s998_s14   ;;  %s781_s16 = sadd.s32 4294967294, %s998_s14   ;;  %s998_s14 = sphi %s1031_s14, %s16_s14   ;;  %s994_s13 = sphi %s1029_s13, %s1201_s13   ;;  %s990_s12 = sphi %s1027_s12, %s1200_s12  }
   0x4   : > { %s31_s17 = sadd.s32 1, %s994_s13  ;;  %p784_p0 = scmp.ge.s32.totalorder %s998_s14, 1 }
   0x5   : > { %p33_p1 = scmp.ge.s32.totalorder %s31_s17, 2  ;;  %p166_p2 = scmp.lt.s32.totalorder %s998_s14, 3 }
   0x7   : > { %s1203_s17 = smov (%p33_p1, %s31_s17), 0  ;;  %p167_p3 = pnand %p784_p0, %p166_p2 }
   0x8   : > { %p201_p4 = scmp.eq.s32.totalorder (!%p167_p3), %s990_s12, 0 }
   0x9   : > { %170 = sbr.rel (%p167_p3) target bundleno = 907 (0x38b), region = 32 }
  0x10   : > { %206 = sbr.rel (!%p201_p4) target bundleno = 23 (0x17), region = 36  ;;  %vm207_vm0 = vcmask (%p201_p4), 7168   ;;  %v1000_v0 = vmov (%p201_p4), -1e+30   ;;  %v1001_v1 = vmov (%p201_p4), 0.0  }
  0x11   : > { %208 = vst.msk [vmem:[#allocation3] sm:$0xff] (%p201_p4), %vm207_vm0, %v1000_v0  ;;  %209 = vst.msk [vmem:[#allocation3 + $0x8] sm:$0xff] (%p201_p4), %vm207_vm0, %v1000_v0 }
  0x12   : > { %210 = vst.msk [vmem:[#allocation4] sm:$0xff] (%p201_p4), %vm207_vm0, %v1001_v1  ;;  %211 = vst.msk [vmem:[#allocation4 + $0x8] sm:$0xff] (%p201_p4), %vm207_vm0, %v1001_v1 }
  0x17 PF: > { %p786_p5 = scmp.ne.s32.totalorder %s990_s12, 0 }
  0x18   : > { %v872_v2 = vld [vmem:[%s1196_s1 + $0x4] ss:$16 sps:$4 sm:$0xff] (!%p786_p5)   ;;  %v874_v3 = vld [vmem:[%s1196_s1 + $0xc] ss:$16 sps:$4 sm:$0xff] (!%p786_p5)   ;;  %v1002_v4 = vmov (!%p786_p5), 0   ;;  %v256_v36 = vlaneseq (!%p786_p5)  ;;  %vm609_vm1 = vcmask (!%p786_p5), 7168  }
  0x19   : > { %214 = sbr.rel (%p786_p5) target bundleno = 721 (0x2d1), region = 40  ;;  %474 = vmatprep.mubr.bf16.mxu0 (!%p786_p5), %v1002_v4  ;;  %517 = vmatprep.mubr.bf16.mxu1 (!%p786_p5), %v1002_v4  ;;  %v876_v5 = vld [vmem:[%s1196_s1] ss:$16 sps:$4 sm:$0xff] (!%p786_p5)   ;;  %v877_v6 = vld [vmem:[%s1196_s1 + $0x8] ss:$16 sps:$4 sm:$0xff] (!%p786_p5)  }
  0x1a   : > { %442 = vmatprep.subr.bf16.mxu0 (!%p786_p5), %v872_v2  ;;  %870 = vset.pattern.permute.xlu1 (!%p786_p5), %v1002_v4  ;;  %v878_v7 = vld [vmem:[%s1196_s1 + $0x24] ss:$16 sps:$4 sm:$0xff] (!%p786_p5)   ;;  %v880_v8 = vld [vmem:[%s1196_s1 + $0x2c] ss:$16 sps:$4 sm:$0xff] (!%p786_p5)   ;;  %v882_v9 = vld [vmem:[%s1196_s1 + $0x20] ss:$16 sps:$4 sm:$0xff] (!%p786_p5)  }
  0x1b   : > { %485 = vmatprep.subr.bf16.mxu1 (!%p786_p5), %v874_v3  ;;  %871 = vset.pattern.permute.xlu0 (!%p786_p5), %v1002_v4  ;;  %v883_v10 = vld [vmem:[%s1196_s1 + $0x28] ss:$16 sps:$4 sm:$0xff] (!%p786_p5)   ;;  %v884_v11 = vld [vmem:[%s1196_s1 + $0x44] ss:$16 sps:$4 sm:$0xff] (!%p786_p5)   ;;  %v886_v12 = vld [vmem:[%s1196_s1 + $0x4c] ss:$16 sps:$4 sm:$0xff] (!%p786_p5)  }
  0x1c   : > { %443 = vmatpush1.bf16.msra.mxu0 (!%p786_p5), %v876_v5  ;;  %486 = vmatpush1.bf16.msra.mxu1 (!%p786_p5), %v877_v6  ;;  %v888_v13 = vld [vmem:[%s1196_s1 + $0x40] ss:$16 sps:$4 sm:$0xff] (!%p786_p5)   ;;  %v889_v14 = vld [vmem:[%s1196_s1 + $0x48] ss:$16 sps:$4 sm:$0xff] (!%p786_p5)   ;;  %v890_v15 = vld [vmem:[%s1196_s1 + $0x64] ss:$16 sps:$4 sm:$0xff] (!%p786_p5)  }
  0x1d   : > { %444 = vmatprep.subr.bf16.mxu0 (!%p786_p5), %v878_v7  ;;  %487 = vmatprep.subr.bf16.mxu1 (!%p786_p5), %v880_v8  ;;  %v892_v16 = vld [vmem:[%s1196_s1 + $0x6c] ss:$16 sps:$4 sm:$0xff] (!%p786_p5)   ;;  %v894_v17 = vld [vmem:[%s1196_s1 + $0x60] ss:$16 sps:$4 sm:$0xff] (!%p786_p5)   ;;  %v895_v18 = vld [vmem:[%s1196_s1 + $0x68] ss:$16 sps:$4 sm:$0xff] (!%p786_p5)  }
  0x1e   : > { %v896_v19 = vld [vmem:[%s1196_s1 + $0x84] ss:$16 sps:$4 sm:$0xff] (!%p786_p5)   ;;  %v898_v20 = vld [vmem:[%s1196_s1 + $0x8c] ss:$16 sps:$4 sm:$0xff] (!%p786_p5)   ;;  %v900_v21 = vld [vmem:[%s1196_s1 + $0x80] ss:$16 sps:$4 sm:$0xff] (!%p786_p5)  }
  0x1f   : > { %v901_v22 = vld [vmem:[%s1196_s1 + $0x88] ss:$16 sps:$4 sm:$0xff] (!%p786_p5)   ;;  %v902_v23 = vld [vmem:[%s1196_s1 + $0xa4] ss:$16 sps:$4 sm:$0xff] (!%p786_p5)   ;;  %v904_v24 = vld [vmem:[%s1196_s1 + $0xac] ss:$16 sps:$4 sm:$0xff] (!%p786_p5)  }
  0x20   : > { %445 = vmatpush1.bf16.msra.mxu0 %v882_v9  ;;  %488 = vmatpush1.bf16.msra.mxu1 %v883_v10  ;;  %v906_v25 = vld [vmem:[%s1196_s1 + $0xa0] ss:$16 sps:$4 sm:$0xff]   ;;  %v907_v26 = vld [vmem:[%s1196_s1 + $0xa8] ss:$16 sps:$4 sm:$0xff]   ;;  %v908_v27 = vld [vmem:[%s1196_s1 + $0xc4] ss:$16 sps:$4 sm:$0xff]  }
  0x21   : > { %446 = vmatprep.subr.bf16.mxu0 %v884_v11  ;;  %489 = vmatprep.subr.bf16.mxu1 %v886_v12  ;;  %v910_v28 = vld [vmem:[%s1196_s1 + $0xcc] ss:$16 sps:$4 sm:$0xff]   ;;  %v912_v29 = vld [vmem:[%s1196_s1 + $0xc0] ss:$16 sps:$4 sm:$0xff]   ;;  %v913_v30 = vld [vmem:[%s1196_s1 + $0xc8] ss:$16 sps:$4 sm:$0xff]  }
  0x22   : > { %v914_v31 = vld [vmem:[%s1196_s1 + $0xe4] ss:$16 sps:$4 sm:$0xff]   ;;  %v916_v32 = vld [vmem:[%s1196_s1 + $0xec] ss:$16 sps:$4 sm:$0xff]   ;;  %v918_v33 = vld [vmem:[%s1196_s1 + $0xe0] ss:$16 sps:$4 sm:$0xff]  }
  0x23   : > { %v919_v34 = vld [vmem:[%s1196_s1 + $0xe8] ss:$16 sps:$4 sm:$0xff]   ;;  %v920_v35 = vld [vmem:[%s1195_s0] sm:$0xff]   ;;  %v257_v37 = vshrl.u32 %v256_v36, 7 }
  0x24   : > { %447 = vmatpush1.bf16.msra.mxu0 %v888_v13  ;;  %490 = vmatpush1.bf16.msra.mxu1 %v889_v14  ;;  %v252_v40 = vld [vmem:[%s1197_s2] sm:$0xf]  ;;  %v540_v8 = vld [vmem:[#allocation3 + $0x8] sm:$0xff] }
  0x25   : > { %448 = vmatprep.subr.bf16.mxu0 %v890_v15  ;;  %491 = vmatprep.subr.bf16.mxu1 %v892_v16  ;;  %v258_v38 = vsub.s32 0, %v257_v37  ;;  %v266_v39 = vsub.s32 2, %v257_v37  ;;  %v262_v41 = vsub.s32 1, %v257_v37  ;;  %v270_v42 = vsub.s32 3, %v257_v37  ;;  %v539_v5 = vld [vmem:[#allocation3] sm:$0xff] }
  0x27   : > { %v259_v43 = vrot.slane %v252_v40, %v258_v38  ;;  %v267_v44 = vrot.slane %v252_v40, %v266_v39  ;;  %v263_v45 = vrot.slane %v252_v40, %v262_v41  ;;  %v271_v46 = vrot.slane %v252_v40, %v270_v42 }
  0x28   : > { %449 = vmatpush1.bf16.msra.mxu0 %v894_v17  ;;  %492 = vmatpush1.bf16.msra.mxu1 %v895_v18 }
  0x29   : > { %450 = vmatprep.subr.bf16.mxu0 %v896_v19  ;;  %493 = vmatprep.subr.bf16.mxu1 %v898_v20 }
  0x2c   : > { %451 = vmatpush1.bf16.msra.mxu0 %v900_v21  ;;  %494 = vmatpush1.bf16.msra.mxu1 %v901_v22 }
  0x2d   : > { %452 = vmatprep.subr.bf16.mxu0 %v902_v23  ;;  %495 = vmatprep.subr.bf16.mxu1 %v904_v24 }
  0x30   : > { %453 = vmatpush1.bf16.msra.mxu0 %v906_v25  ;;  %496 = vmatpush1.bf16.msra.mxu1 %v907_v26 }
  0x31   : > { %454 = vmatprep.subr.bf16.mxu0 %v908_v27  ;;  %497 = vmatprep.subr.bf16.mxu1 %v910_v28 }
  0x34   : > { %455 = vmatpush1.bf16.msra.mxu0 %v912_v29  ;;  %498 = vmatpush1.bf16.msra.mxu1 %v913_v30 }
  0x35   : > { %456 = vmatprep.subr.bf16.mxu0 %v914_v31  ;;  %499 = vmatprep.subr.bf16.mxu1 %v916_v32 }
  0x38   : > { %457 = vmatpush1.bf16.msra.mxu0 %v918_v33  ;;  %500 = vmatpush1.bf16.msra.mxu1 %v919_v34 }
  0x3b   : > { %475 = vmatmul.mubr.bf16.vlgmr.msra.gmra.mrb[0].mxu0 %v920_v35  ;;  %518 = vmatmul.mubr.bf16.vlgmr.msra.gmra.mrb[0].mxu1 %v920_v35 }
 0x10e   : > { %v476_v47 = vpop.f32.mrb[0].mxu0  ;;  %v519_v48 = vpop.f32.mrb[0].mxu1 }
 0x10f   : > { %v477_v49 = vadd.f32 %v476_v47, %v259_v43  ;;  %v520_v50 = vadd.f32 %v519_v48, %v267_v44  ;;  %v478_v51 = vpop.f32.mrb[1].mxu0  ;;  %v521_v52 = vpop.f32.mrb[1].mxu1  ;;  %v553_v48 = vld [vmem:[#allocation4] sm:$0xff] }
 0x110   : > { %v479_v53 = vadd.f32 %v478_v51, %v263_v45  ;;  %v522_v54 = vadd.f32 %v521_v52, %v271_v46  ;;  %v480_v55 = vpop.f32.mrb[2].mxu0  ;;  %v523_v56 = vpop.f32.mrb[2].mxu1  ;;  %v554_v52 = vld [vmem:[#allocation4 + $0x8] sm:$0xff] }
 0x111   : > { %531 = vst [vmem:[#allocation2] sm:$0xff] %v477_v49  ;;  %533 = vst [vmem:[#allocation2 + $0x10] sm:$0xff] %v520_v50  ;;  %v481_v57 = vadd.f32 %v480_v55, %v259_v43  ;;  %v524_v58 = vadd.f32 %v523_v56, %v267_v44  ;;  %v482_v59 = vpop.f32.mrb[3].mxu0  ;;  %v525_v60 = vpop.f32.mrb[3].mxu1  ;;  %v541_v61 = vmax.f32 %v477_v49, %v520_v50 }
 0x112   : > { %532 = vst [vmem:[#allocation2 + $0x8] sm:$0xff] %v479_v53  ;;  %534 = vst [vmem:[#allocation2 + $0x18] sm:$0xff] %v522_v54  ;;  %v483_v62 = vadd.f32 %v482_v59, %v263_v45  ;;  %v526_v63 = vadd.f32 %v525_v60, %v271_v46  ;;  %v542_v0 = vmax.f32 %v479_v53, %v522_v54 }
 0x113   : > { %535 = vst [vmem:[#allocation2 + $0x20] sm:$0xff] %v481_v57  ;;  %537 = vst [vmem:[#allocation2 + $0x30] sm:$0xff] %v524_v58  ;;  %v546_v2 = vmax.f32 %v481_v57, %v524_v58 }
 0x114   : > { %536 = vst [vmem:[#allocation2 + $0x28] sm:$0xff] %v483_v62  ;;  %538 = vst [vmem:[#allocation2 + $0x38] sm:$0xff] %v526_v63  ;;  %v543_v1 = vmax.f32 %v541_v61, %v542_v0  ;;  %v547_v3 = vmax.f32 %v483_v62, %v526_v63 }
 0x116   : > { %544 = vmax.xlane.f32.xlu0 %v543_v1  ;;  %v548_v4 = vmax.f32 %v546_v2, %v547_v3 }
 0x11a   : > { %549 = vmax.xlane.f32.xlu0 %v548_v4 }
 0x1a3   : > { %v545_v6 = vpop.xlane.xlu0 %544 }
 0x1a4   : > { %v551_v7 = vmax.f32 %v539_v5, %v545_v6 }
 0x1a6   : > { %v555_v9 = vsub.f32 %v539_v5, %v551_v7  ;;  %612 = vst.msk [vmem:[#allocation3] sm:$0xff] %vm609_vm1, %v551_v7  ;;  %565 = vperm.xlu1 %870, %v551_v7  }
 0x1a7   : > { %v550_v10 = vpop.xlane.xlu0 %549 }
 0x1a8   : > { %v552_v11 = vmax.f32 %v540_v8, %v550_v10  ;;  %v557_v45 = vmul.f32 1.442695, %v555_v9 }
 0x1aa   : > { %v556_v12 = vsub.f32 %v540_v8, %v552_v11  ;;  %613 = vst.msk [vmem:[#allocation3 + $0x8] sm:$0xff] %vm609_vm1, %v552_v11  ;;  %570 = vperm.xlu1 %870, %v552_v11  }
 0x1ac   : > { %v559_v46 = vmul.f32 1.442695, %v556_v12 }
 0x225   : > { %v566_v13 = vpop.permute.xlu1 %565 }
 0x226   : > { %v573_v14 = vsub.f32 %v477_v49, %v566_v13  ;;  %v574_v15 = vsub.f32 %v479_v53, %v566_v13  ;;  %v575_v16 = vsub.f32 %v520_v50, %v566_v13  ;;  %v576_v17 = vsub.f32 %v522_v54, %v566_v13 }
 0x228   : > { %v581_v18 = vmul.f32 1.442695, %v573_v14  ;;  %v583_v19 = vmul.f32 1.442695, %v574_v15  ;;  %v585_v20 = vmul.f32 1.442695, %v575_v16 }
 0x229   : > { %v587_v21 = vmul.f32 1.442695, %v576_v17  ;;  %v571_v22 = vpop.permute.xlu1 %570 }
 0x22a   : > { %921 = vpow2.f32 %v581_v18  ;;  %v577_v23 = vsub.f32 %v481_v57, %v571_v22  ;;  %v578_v24 = vsub.f32 %v483_v62, %v571_v22  ;;  %v579_v25 = vsub.f32 %v524_v58, %v571_v22 }
 0x22b   : > { %923 = vpow2.f32 %v583_v19  ;;  %v580_v26 = vsub.f32 %v526_v63, %v571_v22 }
 0x22c   : > { %925 = vpow2.f32 %v585_v20  ;;  %v589_v27 = vmul.f32 1.442695, %v577_v23  ;;  %v591_v28 = vmul.f32 1.442695, %v578_v24  ;;  %v593_v29 = vmul.f32 1.442695, %v579_v25 }
 0x22d   : > { %927 = vpow2.f32 %v587_v21  ;;  %v595_v30 = vmul.f32 1.442695, %v580_v26 }
 0x22e   : > { %929 = vpow2.f32 %v589_v27 }
 0x22f   : > { %931 = vpow2.f32 %v591_v28 }
 0x230   : > { %933 = vpow2.f32 %v593_v29 }
 0x231   : > { %935 = vpow2.f32 %v595_v30 }
 0x232   : > { %937 = vpow2.f32 %v557_v45 }
 0x233   : > { %939 = vpow2.f32 %v559_v46 }
 0x234   : > { %v922_v31 = vpop.eup %921 }
 0x235   : > { %v924_v32 = vpop.eup %923 }
 0x236   : > { %v926_v33 = vpop.eup %925  ;;  %v597_v34 = vadd.f32 %v924_v32, %v922_v31 }
 0x237   : > { %v928_v35 = vpop.eup %927 }
 0x238   : > { %v930_v36 = vpop.eup %929  ;;  %v598_v37 = vadd.f32 %v926_v33, %v597_v34 }
 0x239   : > { %v932_v38 = vpop.eup %931 }
 0x23a   : > { %v599_v39 = vadd.f32 %v928_v35, %v598_v37  ;;  %v602_v40 = vadd.f32 %v932_v38, %v930_v36  ;;  %v934_v41 = vpop.eup %933 }
 0x23b   : > { %v936_v43 = vpop.eup %935 }
 0x23c   : > { %600 = vadd.xlane.f32.xlu0 %v599_v39  ;;  %v603_v42 = vadd.f32 %v934_v41, %v602_v40  ;;  %v938_v47 = vpop.eup %937 }
 0x23d   : > { %v561_v49 = vmul.f32 %v938_v47, %v553_v48  ;;  %v940_v50 = vpop.eup %939 }
 0x23e   : > { %v604_v44 = vadd.f32 %v936_v43, %v603_v42  ;;  %v562_v54 = vmul.f32 %v940_v50, %v554_v52 }
 0x240   : > { %605 = vadd.xlane.f32.xlu1 %v604_v44 }
 0x2c9   : > { %v601_v51 = vpop.xlane.xlu0 %600 }
 0x2ca   : > { %v607_v53 = vadd.f32 %v601_v51, %v561_v49 }
 0x2cc   : > { %610 = vst.msk [vmem:[#allocation4] sm:$0xff] %vm609_vm1, %v607_v53 }
 0x2cd   : > { %v606_v55 = vpop.xlane.xlu1 %605 }
 0x2ce   : > { %v608_v56 = vadd.f32 %v606_v55, %v562_v54 }
 0x2d0   : > { %611 = vst.msk [vmem:[#allocation4 + $0x8] sm:$0xff] %vm609_vm1, %v608_v56 }
 0x2d1 PF: > { %p614_p6 = scmp.eq.s32.totalorder %s990_s12, 1 }
 0x2d2   : > { %v619_v60 = vld [vmem:[#allocation3] sm:$0xff] (%p614_p6)  ;;  %v620_v63 = vld [vmem:[#allocation3 + $0x8] sm:$0xff] (%p614_p6)  ;;  %vm629_vm2 = vcmask (%p614_p6), 7168  }
 0x2d3   : > { %618 = sbr.rel (!%p614_p6) target bundleno = 744 (0x2e8), region = 44  ;;  %v621_v57 = vld [vmem:[#allocation4] sm:$0xff] (%p614_p6) }
 0x2d4   : > { %941 = vlog2.f32 (%p614_p6), %v621_v57 }
 0x2d7   : > { %v622_v58 = vld [vmem:[#allocation4 + $0x8] sm:$0xff] (%p614_p6) }
 0x2d8   : > { %943 = vlog2.f32 (%p614_p6), %v622_v58 }
 0x2de   : > { %v942_v59 = vpop.eup %941 }
 0x2df   : > { %v624_v62 = vmul.f32 0.6931472, %v942_v59 }
 0x2e1   : > { %v627_v1 = vadd.f32 %v624_v62, %v619_v60 }
 0x2e2   : > { %v944_v61 = vpop.eup %943 }
 0x2e3   : > { %v626_v0 = vmul.f32 0.6931472, %v944_v61  ;;  %630 = vst.msk [vmem:[#allocation5] sm:$0xff] %vm629_vm2, %v627_v1 }
 0x2e5   : > { %v628_v2 = vadd.f32 %v626_v0, %v620_v63 }
 0x2e7   : > { %631 = vst.msk [vmem:[#allocation5 + $0x8] sm:$0xff] %vm629_vm2, %v628_v2 }
 0x2e8 PF: > { %p821_p7 = scmp.ne.s32.totalorder %s990_s12, 1 }
 0x2e9   : > { %v1003_v4 = vmov (!%p821_p7), 0   ;;  %v638_v6 = vld [vmem:[#allocation2] sm:$0xff] (!%p821_p7)  ;;  %v639_v7 = vld [vmem:[#allocation2 + $0x8] sm:$0xff] (!%p821_p7)  ;;  %v640_v8 = vld [vmem:[#allocation2 + $0x10] sm:$0xff] (!%p821_p7) }
 0x2ea   : > { %634 = sbr.rel (%p821_p7) target bundleno = 883 (0x373), region = 48  ;;  %v646_v3 = vld [vmem:[#allocation5] sm:$0xff] (!%p821_p7)  ;;  %945 = vset.pattern.permute.xlu0 (!%p821_p7), %v1003_v4  ;;  %v641_v9 = vld [vmem:[#allocation2 + $0x18] sm:$0xff] (!%p821_p7)  ;;  %v643_v16 = vld [vmem:[#allocation2 + $0x28] sm:$0xff] (!%p821_p7) }
 0x2eb   : > { %650 = vperm.xlu0 (!%p821_p7), %945, %v646_v3   ;;  %v642_v15 = vld [vmem:[#allocation2 + $0x20] sm:$0xff] (!%p821_p7)  ;;  %v644_v17 = vld [vmem:[#allocation2 + $0x30] sm:$0xff] (!%p821_p7)  ;;  %v645_v18 = vld [vmem:[#allocation2 + $0x38] sm:$0xff] (!%p821_p7) }
 0x2ee   : > { %v647_v5 = vld [vmem:[#allocation5 + $0x8] sm:$0xff] (!%p821_p7) }
 0x2ef   : > { %655 = vperm.xlu0 (!%p821_p7), %945, %v647_v5  }
 0x36a   : > { %v651_v10 = vpop.permute.xlu0 %650 }
 0x36b   : > { %v658_v11 = vsub.f32 %v638_v6, %v651_v10  ;;  %v659_v12 = vsub.f32 %v639_v7, %v651_v10  ;;  %v660_v13 = vsub.f32 %v640_v8, %v651_v10  ;;  %v661_v14 = vsub.f32 %v641_v9, %v651_v10 }
 0x36d   : > { %666 = vst [vmem:[#allocation6] sm:$0xff] %v658_v11  ;;  %667 = vst [vmem:[#allocation6 + $0x8] sm:$0xff] %v659_v12 }
 0x36e   : > { %668 = vst [vmem:[#allocation6 + $0x10] sm:$0xff] %v660_v13  ;;  %669 = vst [vmem:[#allocation6 + $0x18] sm:$0xff] %v661_v14  ;;  %v656_v19 = vpop.permute.xlu0 %655 }
 0x36f   : > { %v662_v20 = vsub.f32 %v642_v15, %v656_v19  ;;  %v663_v21 = vsub.f32 %v643_v16, %v656_v19  ;;  %v664_v22 = vsub.f32 %v644_v17, %v656_v19  ;;  %v665_v23 = vsub.f32 %v645_v18, %v656_v19 }
 0x371   : > { %670 = vst [vmem:[#allocation6 + $0x20] sm:$0xff] %v662_v20  ;;  %671 = vst [vmem:[#allocation6 + $0x28] sm:$0xff] %v663_v21 }
 0x372   : > { %672 = vst [vmem:[#allocation6 + $0x30] sm:$0xff] %v664_v22  ;;  %673 = vst [vmem:[#allocation6 + $0x38] sm:$0xff] %v665_v23 }
 0x373 PF: > { %p1161_p8 = scmp.eq.s32.totalorder %s780_s15, 1  ;;  %s1004_s23 = smov [#allocation6]  }
 0x374   : > { %s693_s24 = sshll.u32 %s1004_s23, 4  ;;  %s694_s24 = int_to_ptr.vmem [resolvable:$true] %s693_s24 }
 0x375   : > { %s946_s25 = scalar_lea.vmem %s694_s24, 1024  ;;  %s952_s26 = scalar_lea.vmem %s694_s24, 2048 }
 0x376   : > { %p947_p9 = scmp.ne.s32.totalorder %s694_s24, %s946_s25  ;;  %p953_p12 = scmp.lt.s32.totalorder %s694_s24, %s694_s24 }
 0x377   : > { %p954_p13 = scmp.lt.s32.totalorder %s952_s26, %s946_s25 }
 0x378   : > { %p948_p10 = pnand %p947_p9, %p1161_p8 }
 0x379   : > { %p955_p0 = por %p954_p13, %p953_p12 }
 0x37a   : > { %p949_p11 = pneg %p948_p10 }
 0x37c   : > { %p956_p1 = pnand %p955_p0, %p949_p11 }
 0x37e   : > { %959 = shalt.err (!%p956_p1)
}
 0x37f   : > { %s960_s28 = scalar_lea.hbm %s1198_s3, 1024 }
 0x380   : > { %p961_p2 = scmp.ne.s32.totalorder %s1198_s3, %s960_s28  ;;  %p966_p5 = scmp.lt.u32.totalorder %s960_s28, %s1198_s3 }
 0x382   : > { %p962_p3 = pnand %p961_p2, %p1161_p8 }
 0x384   : > { %p963_p4 = pneg %p962_p3 }
 0x386   : > { %p968_p6 = pnand %p966_p5, %p963_p4 }
 0x388   : > { %971 = shalt.err (!%p968_p6)
}
 0x389   : > { %s1005_s6 = smov 512   ;;  %s1006_s7 = smov 32  }
 0x38a   : > { %829 = dma.vmem_to_hbm [thread:$0]  (%p1161_p8), %s694_s24, 1024, %s1198_s3, [#allocation7], %s1005_s6, %s1005_s6, %s1006_s7  }
 0x38b PF: > { %p837_p7 = scmp.ge.s32.totalorder %s998_s14, 2  ;;  %p838_p9 = scmp.eq.s32.totalorder %s781_s16, 1 }
 0x38d   : > { %p833_p10 = pnand %p838_p9, %p837_p7 }
 0x38f   : > { %985 = dma.done.wait (!%p833_p10), [#allocation7], 1024  }
 0x390   : > { %987 = vsyncadd (!%p833_p10), [#allocation7], 4294966272  ;;  %s16_s14 = sadd.s32 1, %s998_s14   ;;  %s1200_s12 = smov %s994_s13 }
 0x391   : > { %p13_p11 = scmp.ge.s32.totalorder %s16_s14, 4   ;;  %s1201_s13 = smov %s1203_s17 }
 0x393   :  { %15 = sbr.rel (!%p13_p11) target bundleno = 3 (0x3), region = 87 }
 0x39a   :  { %714 = vsyncpa [#allocation7], 1 }
 0x39b   :  { %716 = vsyncpa [#allocation7 + $0x1], 1 }

</bundles_post_ra>
